<compile_context>
chip_gen: v7x
topology: tpu7x:2x2x1
jax: 0.10.0
libtpu: 0.0.40
codegen_flags: <defaults>
</compile_context>

<pallas_src>
import functools

import jax
import jax.numpy as jnp
from jax.experimental import pallas as pl
from jax.experimental.pallas import tpu as pltpu

_LANE = 128  # lane width of the folded view; also a multiple of 4 (one anchor = 4 lanes)


def _bbox_decode_kernel(boxes_ref, deltas_ref, out_ref, *, mean, std):
    """Decode one (bm, 128) tile of the interleaved [x1,y1,x2,y2,...] stream.

    Lane phase (lane_index % 4) identifies the coordinate; the cross-coordinate
    "partner" values (x1<->x2, y1<->y2, dx<->dw, dy<->dh) are fetched with two
    static lane rotations.  Group-of-4 anchors never straddle a 128-lane row,
    and the rotation wrap-around lanes are never selected by the masks.
    """
    b = boxes_ref[...].astype(jnp.float32)    # (bm, 128)
    d = deltas_ref[...].astype(jnp.float32)

    shape = b.shape
    axis = len(shape) - 1
    lane = jax.lax.broadcasted_iota(jnp.int32, shape, axis)
    phase = lane & 3                    # 0:x1  1:y1  2:x2  3:y2
    is_lo = phase < 2                   # lanes holding x1/y1 (outputs x1'/y1')
    is_x = (phase & 1) == 0             # x-coordinate lanes vs y-coordinate lanes

    # roll(v, +2)[j] == v[j-2] ; roll(v, 126)[j] == v[j+2]  (jnp.roll semantics,
    # positive shifts only; axis length is always 128 here).
    b_prev = pltpu.roll(b, 2, axis)
    b_next = pltpu.roll(b, _LANE - 2, axis)
    d_prev = pltpu.roll(d, 2, axis)
    d_next = pltpu.roll(d, _LANE - 2, axis)

    lo = jnp.where(is_lo, b, b_prev)        # x1 (x-lanes) / y1 (y-lanes)
    hi = jnp.where(is_lo, b_next, b)        # x2 / y2
    d_ctr = jnp.where(is_lo, d, d_prev)     # dx / dy  (raw deltas)
    d_sz = jnp.where(is_lo, d_next, d)      # dw / dh  (raw deltas)

    d_ctr = d_ctr * jnp.where(is_x, std[0], std[1]) + jnp.where(is_x, mean[0], mean[1])
    d_sz = d_sz * jnp.where(is_x, std[2], std[3]) + jnp.where(is_x, mean[2], mean[3])

    size = hi - lo                          # widths (x-lanes) / heights (y-lanes)
    ctr = lo + 0.5 * size                   # ctr_x / ctr_y
    pred_ctr = ctr + d_ctr * size
    pred_size = jnp.exp(d_sz) * size        # EUP

    half = jnp.where(is_lo, -0.5, 0.5)
    out_ref[...] = (pred_ctr + half * pred_size).astype(out_ref.dtype)


def _round_up(x, m):
    return (x + m - 1) // m * m


def bbox_transform(boxes, deltas,
                   mean=(0.0, 0.0, 0.0, 0.0),
                   std=(0.1, 0.1, 0.2, 0.2),
                   *, block_rows=2048, min_grid_steps=8):
    """boxes, deltas: (B, N, 4) -> predicted boxes (B, N, 4) (BBoxTransform.forward)."""
    assert boxes.shape == deltas.shape and boxes.shape[-1] == 4
    B, N, _ = boxes.shape
    out_dtype = jnp.promote_types(boxes.dtype, deltas.dtype)

    # Free, contiguous reshape of the interleaved coordinate stream.
    T = B * N * 4
    bf = boxes.reshape(T)
    df = deltas.reshape(T)

    T_pad = _round_up(T, _LANE)
    if T_pad != T:
        # Ragged case (B*N not a multiple of 32): pad the flat stream by <128
        # elements so it folds onto full 128-lane rows.  One extra pass only in
        # this case; the aligned case does zero extra HBM work.
        # TODO(synk): a (1, bn)-block variant of the same kernel could avoid
        # this pad at the cost of 1/8 sublane density.
        bf = jnp.pad(bf, (0, T_pad - T))
        df = jnp.pad(df, (0, T_pad - T))

    rows = T_pad // _LANE
    bf = bf.reshape(rows, _LANE)
    df = df.reshape(rows, _LANE)

    # Big row-blocks (up to 64K anchors / 1 MiB per operand block) to amortize
    # the ~0.35 us per-step overhead, while keeping >= min_grid_steps steps on
    # a "parallel" axis for pipelining and v7x megacore sharding.  Total VMEM
    # (3 operands x 2 buffers x 1 MiB max) stays far below every generation's
    # scoped limit, so vmem_limit_bytes is left at its default.
    bm = max(8, min(block_rows, _round_up(pl.cdiv(rows, min_grid_steps), 8)))
    if bm >= rows:
        bm = rows
    grid = (pl.cdiv(rows, bm),)

    spec = pl.BlockSpec((bm, _LANE), lambda i: (i, 0))
    kernel = functools.partial(
        _bbox_decode_kernel,
        mean=tuple(float(m) for m in mean),
        std=tuple(float(s) for s in std),
    )

    out = pl.pallas_call(
        kernel,
        out_shape=jax.ShapeDtypeStruct((rows, _LANE), out_dtype),
        grid=grid,
        in_specs=[spec, spec],
        out_specs=spec,
        compiler_params=pltpu.CompilerParams(
            dimension_semantics=("parallel",),
        ),
    )(bf, df)

    out = out.reshape(T_pad)
    if T_pad != T:
        out = out[:T]
    return out.reshape(B, N, 4)


def reference(boxes, deltas,
              mean=(0.0, 0.0, 0.0, 0.0),
              std=(0.1, 0.1, 0.2, 0.2)):
    """Pure-JAX transliteration of the PyTorch forward (correctness check)."""
    widths = boxes[:, :, 2] - boxes[:, :, 0]
    heights = boxes[:, :, 3] - boxes[:, :, 1]
    ctr_x = boxes[:, :, 0] + 0.5 * widths
    ctr_y = boxes[:, :, 1] + 0.5 * heights

    dx = deltas[:, :, 0] * std[0] + mean[0]
    dy = deltas[:, :, 1] * std[1] + mean[1]
    dw = deltas[:, :, 2] * std[2] + mean[2]
    dh = deltas[:, :, 3] * std[3] + mean[3]

    pred_ctr_x = ctr_x + dx * widths
    pred_ctr_y = ctr_y + dy * heights
    pred_w = jnp.exp(dw) * widths
    pred_h = jnp.exp(dh) * heights

    return jnp.stack([pred_ctr_x - 0.5 * pred_w,
                      pred_ctr_y - 0.5 * pred_h,
                      pred_ctr_x + 0.5 * pred_w,
                      pred_ctr_y + 0.5 * pred_h], axis=2)


if __name__ == "__main__":
    key = jax.random.PRNGKey(0)
    # N=512 exercises the aligned fast path (no pad/slice at all);
    # N=300 exercises the ragged fallback (flat pad by <128 elements).
    for (B, N) in ((2, 512), (2, 300)):
        key, k1, k2, k3 = jax.random.split(key, 4)
        ctr = jax.random.uniform(k1, (B, N, 2), minval=10.0, maxval=100.0)
        wh = jax.random.uniform(k2, (B, N, 2), minval=4.0, maxval=40.0)
        boxes = jnp.concatenate([ctr - 0.5 * wh, ctr + 0.5 * wh], axis=-1)
        boxes = boxes.astype(jnp.float32)
        deltas = (0.5 * jax.random.normal(k3, (B, N, 4))).astype(jnp.float32)

        out = jax.block_until_ready(bbox_transform(boxes, deltas))
        ref = reference(boxes, deltas)
        assert out.shape == (B, N, 4), out.shape
        err = float(jnp.max(jnp.abs(out - ref)))
        assert jnp.allclose(out, ref, atol=1e-4, rtol=1e-4), err

    print("KERNEL_OK")
</pallas_src>

<mosaic_0001>
module attributes {stable_mosaic.version = 11 : i64} {
  func.func @_bbox_decode_kernel(%arg0: i32, %arg1: memref<8x128xf32, #tpu.memory_space<vmem>>, %arg2: memref<8x128xf32, #tpu.memory_space<vmem>>, %arg3: memref<8x128xf32, #tpu.memory_space<vmem>>) attributes {dimension_semantics = [#tpu.dimension_semantics<parallel>], iteration_bounds = array<i64: 4>, scalar_prefetch = 0 : i64, scratch_operands = 0 : i64, tpu.core_type = #tpu.core_type<tc>, window_params = [{transform_indices = @transform_0, window_bounds = array<i64: 8, 128>}, {transform_indices = @transform_1, window_bounds = array<i64: 8, 128>}, {transform_indices = @transform_2, window_bounds = array<i64: 8, 128>}]} {
    %c0 = arith.constant 0 : index
    %c0_0 = arith.constant 0 : index
    %0 = vector.load %arg1[%c0, %c0_0] : memref<8x128xf32, #tpu.memory_space<vmem>>, vector<8x128xf32>
    %c0_1 = arith.constant 0 : index
    %c0_2 = arith.constant 0 : index
    %1 = vector.load %arg2[%c0_1, %c0_2] : memref<8x128xf32, #tpu.memory_space<vmem>>, vector<8x128xf32>
    %2 = tpu.iota {dimensions = array<i32: 1>} : vector<8x128xi32>
    %c3_i32 = arith.constant 3 : i32
    %3 = vector.broadcast %c3_i32 : i32 to vector<8x128xi32>
    %4 = arith.andi %2, %3 : vector<8x128xi32>
    %c2_i32 = arith.constant 2 : i32
    %5 = vector.broadcast %c2_i32 : i32 to vector<8x128xi32>
    %6 = arith.cmpi slt, %4, %5 : vector<8x128xi32>
    %c1_i32 = arith.constant 1 : i32
    %7 = vector.broadcast %c1_i32 : i32 to vector<8x128xi32>
    %8 = arith.andi %4, %7 : vector<8x128xi32>
    %c0_i32 = arith.constant 0 : i32
    %9 = vector.broadcast %c0_i32 : i32 to vector<8x128xi32>
    %10 = arith.cmpi eq, %8, %9 : vector<8x128xi32>
    %c2_i32_3 = arith.constant 2 : i32
    %11 = tpu.dynamic_rotate %0 by %c2_i32_3 dim 1 : vector<8x128xf32>, i32 -> vector<8x128xf32>
    %c126_i32 = arith.constant 126 : i32
    %12 = tpu.dynamic_rotate %0 by %c126_i32 dim 1 : vector<8x128xf32>, i32 -> vector<8x128xf32>
    %c2_i32_4 = arith.constant 2 : i32
    %13 = tpu.dynamic_rotate %1 by %c2_i32_4 dim 1 : vector<8x128xf32>, i32 -> vector<8x128xf32>
    %c126_i32_5 = arith.constant 126 : i32
    %14 = tpu.dynamic_rotate %1 by %c126_i32_5 dim 1 : vector<8x128xf32>, i32 -> vector<8x128xf32>
    %15 = arith.select %6, %0, %11 : vector<8x128xi1>, vector<8x128xf32>
    %16 = arith.select %6, %12, %0 : vector<8x128xi1>, vector<8x128xf32>
    %17 = arith.select %6, %1, %13 : vector<8x128xi1>, vector<8x128xf32>
    %18 = arith.select %6, %14, %1 : vector<8x128xi1>, vector<8x128xf32>
    %cst = arith.constant 1.000000e-01 : f32
    %cst_6 = arith.constant 1.000000e-01 : f32
    %19 = vector.broadcast %cst : f32 to vector<8x128xf32>
    %20 = vector.broadcast %cst_6 : f32 to vector<8x128xf32>
    %21 = arith.select %10, %19, %20 : vector<8x128xi1>, vector<8x128xf32>
    %22 = arith.mulf %17, %21 : vector<8x128xf32>
    %cst_7 = arith.constant 0.000000e+00 : f32
    %cst_8 = arith.constant 0.000000e+00 : f32
    %23 = vector.broadcast %cst_7 : f32 to vector<8x128xf32>
    %24 = vector.broadcast %cst_8 : f32 to vector<8x128xf32>
    %25 = arith.select %10, %23, %24 : vector<8x128xi1>, vector<8x128xf32>
    %26 = arith.addf %22, %25 : vector<8x128xf32>
    %cst_9 = arith.constant 2.000000e-01 : f32
    %cst_10 = arith.constant 2.000000e-01 : f32
    %27 = vector.broadcast %cst_9 : f32 to vector<8x128xf32>
    %28 = vector.broadcast %cst_10 : f32 to vector<8x128xf32>
    %29 = arith.select %10, %27, %28 : vector<8x128xi1>, vector<8x128xf32>
    %30 = arith.mulf %18, %29 : vector<8x128xf32>
    %cst_11 = arith.constant 0.000000e+00 : f32
    %cst_12 = arith.constant 0.000000e+00 : f32
    %31 = vector.broadcast %cst_11 : f32 to vector<8x128xf32>
    %32 = vector.broadcast %cst_12 : f32 to vector<8x128xf32>
    %33 = arith.select %10, %31, %32 : vector<8x128xi1>, vector<8x128xf32>
    %34 = arith.addf %30, %33 : vector<8x128xf32>
    %35 = arith.subf %16, %15 : vector<8x128xf32>
    %cst_13 = arith.constant 5.000000e-01 : f32
    %36 = vector.broadcast %cst_13 : f32 to vector<8x128xf32>
    %37 = arith.mulf %36, %35 : vector<8x128xf32>
    %38 = arith.addf %15, %37 : vector<8x128xf32>
    %39 = arith.mulf %26, %35 : vector<8x128xf32>
    %40 = arith.addf %38, %39 : vector<8x128xf32>
    %41 = math.exp %34 : vector<8x128xf32>
    %42 = arith.mulf %41, %35 : vector<8x128xf32>
    %cst_14 = arith.constant -5.000000e-01 : f32
    %cst_15 = arith.constant 5.000000e-01 : f32
    %43 = vector.broadcast %cst_14 : f32 to vector<8x128xf32>
    %44 = vector.broadcast %cst_15 : f32 to vector<8x128xf32>
    %45 = arith.select %6, %43, %44 : vector<8x128xi1>, vector<8x128xf32>
    %46 = arith.mulf %45, %42 : vector<8x128xf32>
    %47 = arith.addf %40, %46 : vector<8x128xf32>
    %c0_16 = arith.constant 0 : index
    %c0_17 = arith.constant 0 : index
    %48 = vector.load %arg3[%c0_16, %c0_17] : memref<8x128xf32, #tpu.memory_space<vmem>>, vector<8x128xf32>
    tpu.vector_store %arg3[%c0_16, %c0_17], %47 {strides = array<i32>} : memref<8x128xf32, #tpu.memory_space<vmem>>, vector<8x128xf32>,
    return
  }
  func.func @transform_0(%arg0: i32) -> (i32, i32) {
    %c0_i32 = arith.constant 0 : i32
    %c0_i32_0 = arith.constant 0 : i32
    return %arg0, %c0_i32 : i32, i32
  }
  func.func @transform_1(%arg0: i32) -> (i32, i32) {
    %c0_i32 = arith.constant 0 : i32
    %c0_i32_0 = arith.constant 0 : i32
    return %arg0, %c0_i32 : i32, i32
  }
  func.func @transform_2(%arg0: i32) -> (i32, i32) {
    %c0_i32 = arith.constant 0 : i32
    %c0_i32_0 = arith.constant 0 : i32
    return %arg0, %c0_i32 : i32, i32
  }
}

</mosaic_0001>

<bundles_post_ra>
// kernel: tpu_custom_call.1
= control target key start
LH: loop header
LB: loop body
LE: loop exit
PB: predicated region body
PF: predicated region fallthrough
CT: control target
= control target key end

     0   :  { %7 = vsyncpa [#allocation3], 0  ;;  %s787_s0 = inlined_call_operand.hbm [shape: f32[32,128], index: 0, kind: input, shape index: {}]   ;;  %s788_s1 = inlined_call_operand.hbm [shape: f32[32,128], index: 1, kind: input, shape index: {}]   ;;  %s789_s2 = inlined_call_operand.hbm [shape: f32[32,128], index: 2, kind: output, shape index: {}]  }
   0x1   :  { %9 = vsyncpa [#allocation3 + $0x1], 0 }
   0x2   :  { %10 = vsyncpa [#allocation6], 0 }
   0x3   :  { %12 = vsyncpa [#allocation6 + $0x1], 0 }
   0x4   :  { %13 = vsyncpa [#allocation4], 0 }
   0x5   :  { %15 = vsyncpa [#allocation4 + $0x1], 0  ;;  %s561_s9 = smov 0   ;;  %s563_s10 = smov 0  }
   0x6   :  { %s565_s11 = smov 0   ;;  %s567_s12 = smov 0  }
   0x7 LB: > { %s582_s13 = sadd.s32 4294967295, %s538_s12   ;;  %s337_s14 = sadd.s32 4294967294, %s538_s12   ;;  %s538_s12 = sphi %s567_s12, %s809_s12   ;;  %s534_s11 = sphi %s565_s11, %s808_s11   ;;  %s530_s10 = sphi %s563_s10, %s807_s10   ;;  %s526_s9 = sphi %s561_s9, %s806_s9  }
   0x8   : > { %s586_s15 = sadd.s32 1, %s538_s12   ;;  %s28_s16 = sadd.s32 1, %s534_s11 }
   0x9   : > { %s25_s17 = ssub.s32 %s538_s12, %s586_s15  ;;  %p35_p0 = scmp.ne.s32.totalorder %s534_s11, %s530_s10 }
   0xa   : > { %p26_p1 = scmp.eq.s32.totalorder %s25_s17, 0  ;;  %p36_p2 = scmp.eq.s32.totalorder %s538_s12, 0 }
   0xb   : > { %p41_p3 = scmp.ne.s32.totalorder %s530_s10, %s526_s9  ;;  %p42_p4 = scmp.eq.s32.totalorder %s582_s13, 0 }
   0xc   : > { %s598_s18 = scalar_select %p26_p1, %s534_s11, %s28_s16  }
   0xd   : > { %p600_p5 = por %p36_p2, %p35_p0  ;;  %p604_p6 = por %p42_p4, %p41_p3 }
   0xe   : > { %p91_p7 = scmp.eq.s32.totalorder %s582_s13, 3  ;;  %p97_p8 = scmp.eq.s32.totalorder %s337_s14, 3 }
   0xf   : > { %s793_s20 = scalar_select %p604_p6, 1, 0 }
  0x10   : > { %p369_p9 = scmp.lt.s32.totalorder %s538_s12, 4  ;;  %p610_p10 = por %p91_p7, %p35_p0 }
  0x11   : > { %p614_p11 = por %p97_p8, %p41_p3  ;;  %s619_s23 = sand.u32 1, %s534_s11  }
  0x12   : > { %s794_s21 = scalar_select %p610_p10, 1, 0 }
  0x13   : > { %s795_s22 = scalar_select %p614_p11, 1, 0 }
  0x14   : > { %s341_s24 = sshll.u32 %s538_s12, 7  ;;  %s340_s25 = sshll.u32 %s619_s23, 3 }
  0x15   : > { %s628_s28 = scalar_lea.hbm %s787_s0, %s341_s24  ;;  %s121_s29 = scalar_lea.vmem [#allocation2], %s340_s25 }
  0x16   : > { %s128_s30 = sshll.u32 %s121_s29, 4  ;;  %p634_p12 = pnand %p369_p9, %p600_p5  ;;  %s638_s30 = int_to_ptr.vmem [resolvable:$true] %s128_s30 }
  0x17   : > { %s118_s4 = scalar_lea.sflag [#allocation3], %s619_s23  ;;  %s408_s5 = scalar_lea.hbm %s628_s28, 128 }
  0x18   : > { %p409_p1 = scmp.ne.s32.totalorder %s628_s28, %s408_s5  ;;  %p410_p2 = pneg %p634_p12 }
  0x19   : > { %s413_s8 = scalar_lea.hbm %s787_s0, 512  ;;  %p414_p5 = scmp.lt.u32.totalorder %s628_s28, %s787_s0 }
  0x1a   : > { %p411_p3 = pnand %p410_p2, %p409_p1  ;;  %p415_p7 = scmp.lt.u32.totalorder %s413_s8, %s408_s5 }
  0x1b   : > { %p417_p9 = scmp.lt.u32.totalorder %s408_s5, %s628_s28 }
  0x1c   : > { %p412_p4 = pneg %p411_p3  ;;  %p416_p8 = por %p415_p7, %p414_p5 }
  0x1e   : > { %p418_p13 = por %p417_p9, %p416_p8 }
  0x20   : > { %p419_p0 = pnand %p418_p13, %p412_p4 }
  0x22   : > { %422 = shalt.err (!%p419_p0)
}
  0x23   : > { %s423_s17 = scalar_lea.vmem %s638_s30, 128  ;;  %s540_s19 = smov [#allocation2]  }
  0x24   : > { %p424_p1 = scmp.ne.s32.totalorder %s638_s30, %s423_s17  ;;  %s428_s26 = sshll.u32 %s540_s19, 4  ;;  %s429_s26 = int_to_ptr.vmem [resolvable:$false] %s428_s26 }
  0x25   : > { %s430_s27 = scalar_lea.vmem %s429_s26, 256  ;;  %p431_p10 = scmp.lt.s32.totalorder %s638_s30, %s429_s26 }
  0x26   : > { %p426_p3 = pnand %p424_p1, %p410_p2  ;;  %p432_p5 = scmp.lt.s32.totalorder %s430_s27, %s423_s17 }
  0x28   : > { %p427_p11 = pneg %p426_p3  ;;  %p433_p7 = por %p432_p5, %p431_p10 }
  0x2a   : > { %p434_p8 = pnand %p433_p7, %p427_p11 }
  0x2c   : > { %437 = shalt.err (!%p434_p8)
}
  0x2d   : > { %361 = dma.hbm_to_vmem [thread:$0]  (!%p634_p12), %s628_s28, 128, %s638_s30, %s118_s4  }
  0x2e   : > { %p797_p13 = scmp.lt.s32.totalorder %s538_s12, 5  ;;  %p798_p0 = scmp.ge.s32.totalorder %s538_s12, 1 }
  0x2f   : > { %s681_s7 = scalar_lea.hbm %s788_s1, %s341_s24  ;;  %s139_s8 = scalar_lea.vmem [#allocation5], %s340_s25 }
  0x30   : > { %p672_p4 = pnand %p798_p0, %p797_p13  ;;  %s146_s14 = sshll.u32 %s139_s8, 4  ;;  %s147_s14 = int_to_ptr.vmem [resolvable:$true] %s146_s14 }
  0x31   : > { %s136_s28 = scalar_lea.sflag [#allocation6], %s619_s23  ;;  %s438_s30 = scalar_lea.hbm %s681_s7, 128 }
  0x32   : > { %s799_s29 = scalar_select %p672_p4, 1, 0 }
  0x33   : > { %p439_p10 = scmp.ne.s32.totalorder %s681_s7, %s438_s30  ;;  %s443_s24 = scalar_lea.hbm %s788_s1, 512 }
  0x34   : > { %p444_p1 = scmp.lt.u32.totalorder %s681_s7, %s788_s1  ;;  %p445_p3 = scmp.lt.u32.totalorder %s443_s24, %s438_s30 }
  0x35   : > { %p441_p11 = pnand %p439_p10, %p410_p2  ;;  %p447_p7 = scmp.lt.u32.totalorder %s438_s30, %s681_s7 }
  0x36   : > { %p446_p5 = por %p445_p3, %p444_p1 }
  0x37   : > { %p442_p9 = pneg %p441_p11 }
  0x38   : > { %p448_p8 = por %p447_p7, %p446_p5 }
  0x3a   : > { %p449_p13 = pnand %p448_p8, %p442_p9 }
  0x3c   : > { %452 = shalt.err (!%p449_p13)
}
  0x3d   : > { %s453_s23 = scalar_lea.vmem %s147_s14, 128  ;;  %s541_s25 = smov [#allocation5]  }
  0x3e   : > { %p454_p0 = scmp.ne.s32.totalorder %s147_s14, %s453_s23  ;;  %s458_s26 = sshll.u32 %s541_s25, 4  ;;  %s459_s26 = int_to_ptr.vmem [resolvable:$false] %s458_s26 }
  0x3f   : > { %s460_s27 = scalar_lea.vmem %s459_s26, 256  ;;  %p461_p6 = scmp.lt.s32.totalorder %s147_s14, %s459_s26 }
  0x40   : > { %p456_p10 = pnand %p454_p0, %p410_p2  ;;  %p462_p4 = scmp.lt.s32.totalorder %s460_s27, %s453_s23 }
  0x42   : > { %p457_p11 = pneg %p456_p10  ;;  %p463_p1 = por %p462_p4, %p461_p6 }
  0x44   : > { %p464_p3 = pnand %p463_p1, %p457_p11 }
  0x46   : > { %467 = shalt.err (!%p464_p3)
}
  0x47   : > { %364 = dma.hbm_to_vmem [thread:$0]  (!%p634_p12), %s681_s7, 128, %s147_s14, %s136_s28  }
  0x48   : > { %p800_p9 = scmp.ne.s32.totalorder %s799_s29, 0 }
  0x49   : > { %s708_s5 = sand.u32 (!%p800_p9), 1, %s530_s10   ;;  %p801_p6 = scmp.ne.s32.totalorder (!%p800_p9), %s793_s20, 0 }
  0x4a   : > { %155 = sbr.rel (%p800_p9) target bundleno = 236 (0xec), region = 28  ;;  %s711_s6 = sshll.u32 (!%p800_p9), %s708_s5, 3 }
  0x4b   : > { %s158_s8 = scalar_lea.sflag (!%p800_p9), [#allocation3], %s708_s5  ;;  %s161_s30 = scalar_lea.vmem (!%p800_p9), [#allocation2], %s711_s6 }
  0x51   : > { %513 = dma.done.wait (%p801_p6), %s158_s8, 128  }
  0x52   : > { %515 = vsyncadd (%p801_p6), %s158_s8, 4294967168  ;;  %s167_s3 = scalar_lea.sflag [#allocation6], %s708_s5  ;;  %s170_s29 = scalar_lea.vmem [#allocation5], %s711_s6 }
  0x53   : > { %517 = dma.done.wait (%p801_p6), %s167_s3, 128  }
  0x54   : > { %519 = vsyncadd (%p801_p6), %s167_s3, 4294967168  ;;  %v197_v0 = vld [vmem:[%s170_s29] sm:$0xff]  ;;  %v196_v1 = vld [vmem:[%s161_s30] sm:$0xff]  ;;  %s542_s7 = smov 126   ;;  %s543_s14 = smov 2   ;;  %v198_v2 = vlaneseq  ;;  %v544_v22 = vmov 0.5  }
  0x55   : > { %208 = vrot.lane.b32.xlu0 %v197_v0, %s542_s7  ;;  %204 = vrot.lane.b32.xlu1 %v196_v1, %s542_s7  ;;  %s349_s20 = sshll.u32 %s582_s13, 7  ;;  %s195_s28 = scalar_lea.vmem [#allocation7], %s711_s6 }
  0x56   : > { %v199_v3 = vand.u32 127, %v198_v2  ;;  %s244_s4 = sshll.u32 %s195_s28, 4  ;;  %s744_s17 = scalar_lea.hbm %s789_s2, %s349_s20  ;;  %s746_s4 = int_to_ptr.vmem [resolvable:$true] %s244_s4 }
  0x57   : > { %s231_s19 = scalar_lea.sflag [#allocation4], %s708_s5  ;;  %s468_s23 = scalar_lea.vmem %s746_s4, 128 }
  0x58   : > { %v200_v4 = vand.u32 3, %v199_v3  ;;  %p469_p12 = scmp.ne.s32.totalorder %s746_s4, %s468_s23  ;;  %p804_p2 = scmp.ne.s32.totalorder %s794_s21, 0 }
  0x59   : > { %202 = vrot.lane.b32.xlu0 %v196_v1, %s543_s14  ;;  %206 = vrot.lane.b32.xlu1 %v197_v0, %s543_s14  ;;  %s545_s13 = smov [#allocation7]  }
  0x5a   : > { %vm725_vm0 = vcmp.lt.s32.totalorder %v200_v4, 2  ;;  %p470_p4 = pnand %p469_p12, %p804_p2  ;;  %s472_s25 = sshll.u32 %s545_s13, 4  ;;  %s473_s25 = int_to_ptr.vmem [resolvable:$false] %s472_s25 }
  0x5b   : > { %v226_v23 = vsel %vm725_vm0, -0.5, %v544_v22  ;;  %s474_s26 = scalar_lea.vmem %s473_s25, 256  ;;  %p475_p7 = scmp.lt.s32.totalorder %s746_s4, %s473_s25 }
  0x5c   : > { %p471_p5 = pneg %p470_p4  ;;  %p476_p8 = scmp.lt.s32.totalorder %s474_s26, %s468_s23 }
  0x5e   : > { %p477_p13 = por %p476_p8, %p475_p7 }
  0x60   : > { %p478_p0 = pnand %p477_p13, %p471_p5 }
  0xc7   : > { %v209_v6 = vpop.permute.xlu0 %208  ;;  %v205_v7 = vpop.permute.xlu1 %204 }
  0xc8   : > { %v213_v8 = vsel %vm725_vm0, %v209_v6, %v197_v0  ;;  %v211_v11 = vsel %vm725_vm0, %v205_v7, %v196_v1 }
  0xc9   : > { %v216_v9 = vmul.f32 0.2, %v213_v8 }
  0xcb   : > { %v223_v10 = vmul.f32 1.442695, %v216_v9  ;;  %v203_v12 = vpop.permute.xlu0 %202  ;;  %v207_v14 = vpop.permute.xlu1 %206 }
  0xcc   : > { %v210_v13 = vsel %vm725_vm0, %v196_v1, %v203_v12  ;;  %v212_v16 = vsel %vm725_vm0, %v197_v0, %v207_v14 }
  0xcd   : > { %406 = vpow2.f32 %v223_v10  ;;  %v218_v15 = vsub.f32 %v211_v11, %v210_v13  ;;  %v214_v18 = vmul.f32 0.1, %v212_v16 }
  0xcf   : > { %v219_v17 = vmul.f32 0.5, %v218_v15  ;;  %v221_v20 = vmul.f32 %v218_v15, %v214_v18 }
  0xd1   : > { %v220_v19 = vadd.f32 %v219_v17, %v210_v13 }
  0xd3   : > { %v222_v26 = vadd.f32 %v221_v20, %v220_v19 }
  0xd7   : > { %v407_v21 = vpop.eup %406 }
  0xd8   : > { %v225_v24 = vmul.f32 %v407_v21, %v218_v15 }
  0xda   : > { %v227_v25 = vmul.f32 %v226_v23, %v225_v24 }
  0xdc   : > { %v228_v27 = vadd.f32 %v227_v25, %v222_v26 }
  0xde   : > { %229 = vst [vmem:[%s195_s28] sm:$0xff] %v228_v27 }
  0xdf   : > { %481 = shalt.err (!%p478_p0)
}
  0xe0   : > { %s482_s27 = scalar_lea.hbm %s744_s17, 128  ;;  %s486_s8 = scalar_lea.hbm %s789_s2, 512 }
  0xe1   : > { %p483_p10 = scmp.ne.s32.totalorder %s744_s17, %s482_s27  ;;  %p487_p3 = scmp.lt.u32.totalorder %s744_s17, %s789_s2 }
  0xe2   : > { %p488_p9 = scmp.lt.u32.totalorder %s486_s8, %s482_s27  ;;  %p490_p12 = scmp.lt.u32.totalorder %s482_s27, %s744_s17 }
  0xe3   : > { %p484_p11 = pnand %p483_p10, %p804_p2 }
  0xe4   : > { %p489_p6 = por %p488_p9, %p487_p3 }
  0xe5   : > { %p485_p1 = pneg %p484_p11 }
  0xe6   : > { %p491_p4 = por %p490_p12, %p489_p6 }
  0xe8   : > { %p492_p5 = pnand %p491_p4, %p485_p1 }
  0xea   : > { %495 = shalt.err (!%p492_p5)
}
  0xeb   : > { %356 = dma.vmem_to_hbm [thread:$0]  (%p804_p2), %s746_s4, 128, %s744_s17, %s231_s19  }
  0xec PF: > { %p370_p7 = scmp.ge.s32.totalorder %s538_s12, 2  ;;  %s256_s29 = sand.u32 1, %s526_s9  }
  0xed   : > { %p805_p8 = scmp.ne.s32.totalorder %s795_s22, 0  ;;  %s257_s7 = scalar_lea.sflag [#allocation4], %s256_s29 }
  0xef   : > { %p366_p13 = pnand %p370_p7, %p805_p8 }
  0xf1   : > { %521 = dma.done.wait (!%p366_p13), %s257_s7, 128  }
  0xf2   : > { %523 = vsyncadd (!%p366_p13), %s257_s7, 4294967168  ;;  %p18_p0 = scmp.ge.s32.totalorder %s586_s15, 6   ;;  %s806_s9 = smov %s530_s10 }
  0xf3   : > { %s807_s10 = smov %s534_s11  ;;  %s808_s11 = smov %s598_s18 }
  0xf4   : > { %s809_s12 = smov %s586_s15  ;;  %20 = sbr.rel (!%p18_p0) target bundleno = 7 (0x7), region = 86 }
  0xfb   :  { %262 = vsyncpa [#allocation3], 1 }
  0xfc   :  { %264 = vsyncpa [#allocation3 + $0x1], 1 }
  0xfd   :  { %265 = vsyncpa [#allocation6], 1 }
  0xfe   :  { %267 = vsyncpa [#allocation6 + $0x1], 1 }
  0xff   :  { %268 = vsyncpa [#allocation4], 1 }
 0x100   :  { %270 = vsyncpa [#allocation4 + $0x1], 1 }

</bundles_post_ra>
